<compile_context>
chip_gen: v7x
topology: tpu7x:2x2x1
jax: 0.10.0
libtpu: 0.0.40
codegen_flags: <defaults>
</compile_context>

<pallas_src>
import math

import jax
import jax.numpy as jnp
from jax import lax
from jax.experimental import pallas as pl
from jax.experimental.pallas import tpu as pltpu


def _vmem_capacity_bytes():
    """Per-core VMEM capacity; conservative 64 MiB (v7x) fallback."""
    try:
        return int(pltpu.get_tpu_info().vmem_capacity_bytes)
    except Exception:
        return 64 * 1024 * 1024


def _cosine(a, b, axis):
    """Cosine similarity reducing over `axis` (keepdims). Single EUP rsqrt."""
    num = jnp.sum(a * b, axis=axis, keepdims=True)
    den = (jnp.sum(a * a, axis=axis, keepdims=True) *
           jnp.sum(b * b, axis=axis, keepdims=True))
    return num * lax.rsqrt(den + 1e-8)


def _fused_kernel(img_ref, txt_ref, w_imgT_ref, b_img_ref, w_txt_ref,
                  b_txt_ref, o_ref):
    # img_ref : (BB, C, R)  bf16, channels-major (straight from NCHW, no HBM transpose)
    # txt_ref : (BB, T, E)  bf16
    # weights : bf16 (pre-transposed / pre-scaled in wrapper); biases f32
    # o_ref   : (1, BB, 128) f32 lane-dense relevance output
    BB, C, R = img_ref.shape
    _, T, E = txt_ref.shape
    D = w_txt_ref.shape[1]
    f32, bf16 = jnp.float32, jnp.bfloat16

    # ---- Text feature extractor: ONE (BB*T, E) @ (E, D) matmul -------------
    # (reshape is layout-free when T is a multiple of 8; bias is a (1, D)
    #  sublane broadcast; w_txt/b_txt carry the folded 1/sqrt(D) scale)
    txt2 = txt_ref[...].reshape(BB * T, E)
    ft = jnp.dot(txt2, w_txt_ref[...], preferred_element_type=f32)
    ft = jnp.maximum(ft + b_txt_ref[...], 0.0)
    feat_txt = ft.reshape(BB, T, D)                       # f32 (scaled by 1/sqrt(D))
    feat_txt_bf = feat_txt.astype(bf16)

    # ---- Image feature extractor, D-major: batched canonical (D,C)@(C,R) ---
    w_img_b = jnp.broadcast_to(w_imgT_ref[...], (BB, D, C))   # tiny, once/block
    fiT = lax.dot_general(w_img_b, img_ref[...],
                          (((2,), (1,)), ((0,), (0,))),
                          preferred_element_type=f32)          # (BB, D, R)
    # (D,1) bias lane-broadcast: hoisted to once per block (not per batch).
    fiT = jnp.maximum(fiT + b_img_ref[...], 0.0)
    fiT_bf = fiT.astype(bf16)

    # ---- Text->Image attention: canonical (T,D)@(D,R); softmax over regions
    tti = lax.dot_general(feat_txt_bf, fiT_bf,
                          (((2,), (1,)), ((0,), (0,))),
                          preferred_element_type=f32)          # (BB, T, R)
    m = jnp.max(tti, axis=-1, keepdims=True)
    p = jnp.exp(tti - m)
    score = p * pl.reciprocal(jnp.sum(p, axis=-1, keepdims=True), approx=True)
    score_bf = score.astype(bf16)                              # (BB, T, R)

    # ---- Image shared semantic: contraction over R (flash 'bqd,bkd' pattern)
    image_ss = lax.dot_general(score_bf, fiT_bf,
                               (((2,), (2,)), ((0,), (0,))),
                               preferred_element_type=f32)     # (BB, T, D)
    cos_tti = _cosine(feat_txt, image_ss, axis=2)              # (BB, T, 1)
    image_rel = jnp.mean(cos_tti, axis=1, keepdims=True)       # (BB, 1, 1)

    # ---- Text shared semantic, D-major: A^T·B over words --------------------
    text_ssT = lax.dot_general(feat_txt_bf, score_bf,
                               (((1,), (1,)), ((0,), (0,))),
                               preferred_element_type=f32)     # (BB, D, R)
    cos_itt = _cosine(text_ssT, fiT, axis=1)                   # (BB, 1, R)
    text_rel = jnp.mean(cos_itt, axis=2, keepdims=True)        # (BB, 1, 1)

    rel = image_rel + text_rel                                  # (BB, 1, 1)

    # Scatter the BB scalars into the lane-dense output block.  BB is small;
    # these are cheap VPU selects on one (1, BB, 128) buffer (no matmuls live).
    row_ids = lax.broadcasted_iota(jnp.int32, o_ref.shape, 1)
    acc = jnp.zeros(o_ref.shape, f32)
    for b in range(BB):
        acc = acc + jnp.where(row_ids == b, rel[b], 0.0)
    o_ref[...] = acc


def init_params(key, c_in, e_text, d_model):
    k1, k2, k3, k4 = jax.random.split(key, 4)
    return {
        "w_img": 0.05 * jax.random.normal(k1, (c_in, d_model), jnp.float32),
        "b_img": 0.01 * jax.random.normal(k2, (1, d_model), jnp.float32),
        "w_txt": 0.05 * jax.random.normal(k3, (e_text, d_model), jnp.float32),
        "b_txt": 0.01 * jax.random.normal(k4, (1, d_model), jnp.float32),
    }


def image_text_cross_attention(params, text, image, *, max_bb=16):
    """text: (B, T, E) f32; image: (B, C, H, W) f32 (NCHW).  Returns (B,)."""
    B, C, H, W = image.shape
    _, T, E = text.shape
    D = params["w_img"].shape[1]
    R = H * W

    # Channels-major flatten (pure reshape) + bf16 cast: halves HBM traffic.
    img3 = image.reshape(B, C, R).astype(jnp.bfloat16)
    txt = text.astype(jnp.bfloat16)

    # Tiny parameter re-layouts (free).  The 1/sqrt(D) attention scale is
    # folded into the text extractor (cosine relevance is scale-invariant in
    # feat_txt, so the final output is mathematically unchanged).
    inv_sqrt_d = 1.0 / math.sqrt(D)
    w_imgT = jnp.transpose(params["w_img"]).astype(jnp.bfloat16)     # (D, C)
    b_img = params["b_img"].reshape(D, 1).astype(jnp.float32)        # (D, 1)
    w_txt = (params["w_txt"] * inv_sqrt_d).astype(jnp.bfloat16)      # (E, D)
    b_txt = (params["b_txt"] * inv_sqrt_d).astype(jnp.float32)       # (1, D)

    # ---- Generation-aware batch-block size ---------------------------------
    # Per-batch working set (bf16 inputs + f32/bf16 intermediates), rough.
    per_batch = (2 * (C * R + T * E)      # bf16 input block
                 + 10 * D * R             # feat_imgT f32+bf16, text_ssT f32
                 + 6 * T * R              # tti/exp f32 + score bf16
                 + 10 * T * D)            # feat_txt f32+bf16, image_ss f32
    vmem_cap = _vmem_capacity_bytes()             # 64 MiB (v7x) .. 128 MiB (v5e/v6e)
    step_budget = max(2 * 1024 * 1024, vmem_cap // 10)
    BB = max(1, min(max_bb, B, step_budget // max(per_batch, 1)))
    if B > 1:
        # Keep >= 2 grid steps so v7x's 'parallel' axis feeds both TensorCores.
        BB = min(BB, pl.cdiv(B, 2))
    B_pad = pl.cdiv(B, BB) * BB
    if B_pad != B:
        img3 = jnp.pad(img3, ((0, B_pad - B), (0, 0), (0, 0)))
        txt = jnp.pad(txt, ((0, B_pad - B), (0, 0), (0, 0)))
    num_blocks = B_pad // BB

    # Leave headroom for double-buffering of both tensor inputs.
    vmem_limit = int(min(vmem_cap // 2, 64 * 1024 * 1024))

    flops = 2 * B_pad * (D * C * R + T * E * D + 3 * T * D * R)
    transcendentals = B_pad * (T * R + 2 * T + 2 * R)
    bytes_accessed = (2 * B_pad * (C * R + T * E)           # bf16 inputs
                      + 2 * (D * C + E * D) + 4 * 2 * D     # weights / biases
                      + 4 * B_pad * 128)                     # output

    out = pl.pallas_call(
        _fused_kernel,
        out_shape=jax.ShapeDtypeStruct((num_blocks, BB, 128), jnp.float32),
        grid=(num_blocks,),
        in_specs=[
            # TODO(synk): if profiling shows exposed DMA on the image stream,
            #             add pipeline_mode=pl.Buffered(3) to this spec.
            pl.BlockSpec((BB, C, R), lambda i: (i, 0, 0)),
            pl.BlockSpec((BB, T, E), lambda i: (i, 0, 0)),
            pl.BlockSpec((D, C), lambda i: (0, 0)),
            pl.BlockSpec((D, 1), lambda i: (0, 0)),
            pl.BlockSpec((E, D), lambda i: (0, 0)),
            pl.BlockSpec((1, D), lambda i: (0, 0)),
        ],
        out_specs=pl.BlockSpec((1, BB, 128), lambda i: (i, 0, 0)),
        compiler_params=pltpu.CompilerParams(
            dimension_semantics=("parallel",),
            vmem_limit_bytes=vmem_limit),
        cost_estimate=pl.CostEstimate(
            flops=flops, transcendentals=transcendentals,
            bytes_accessed=bytes_accessed),
    )(img3, txt, w_imgT, b_img, w_txt, b_txt)

    return out[..., 0].reshape(B_pad)[:B]


if __name__ == "__main__":
    B, C, H, W = 2, 4, 16, 16
    T, E, D = 8, 32, 32

    key = jax.random.PRNGKey(0)
    k_text, k_img, k_param = jax.random.split(key, 3)

    text = jax.random.normal(k_text, (B, T, E), jnp.float32)
    image = jax.random.normal(k_img, (B, C, H, W), jnp.float32)
    params = init_params(k_param, C, E, D)

    out = jax.jit(image_text_cross_attention)(params, text, image)
    out = jax.block_until_ready(out)
    assert out.shape == (B,), out.shape
    assert bool(jnp.all(jnp.isfinite(out)))
    print("KERNEL_OK")
</pallas_src>

<mosaic_0001>
module attributes {stable_mosaic.version = 11 : i64} {
  func.func @_fused_kernel(%arg0: i32, %arg1: memref<1x4x256xbf16, #tpu.memory_space<vmem>>, %arg2: memref<1x8x32xbf16, #tpu.memory_space<vmem>>, %arg3: memref<32x4xbf16, #tpu.memory_space<vmem>>, %arg4: memref<32x1xf32, #tpu.memory_space<vmem>>, %arg5: memref<32x32xbf16, #tpu.memory_space<vmem>>, %arg6: memref<1x32xf32, #tpu.memory_space<vmem>>, %arg7: memref<1x1x128xf32, #tpu.memory_space<vmem>>) attributes {dimension_semantics = [#tpu.dimension_semantics<parallel>], iteration_bounds = array<i64: 2>, scalar_prefetch = 0 : i64, scratch_operands = 0 : i64, tpu.core_type = #tpu.core_type<tc>, window_params = [{transform_indices = @transform_0, window_bounds = array<i64: 1, 4, 256>}, {transform_indices = @transform_1, window_bounds = array<i64: 1, 8, 32>}, {pipeline_mode = #tpu.pipeline_mode<synchronous>, transform_indices = @transform_2, window_bounds = array<i64: 32, 4>}, {pipeline_mode = #tpu.pipeline_mode<synchronous>, transform_indices = @transform_3, window_bounds = array<i64: 32, 1>}, {pipeline_mode = #tpu.pipeline_mode<synchronous>, transform_indices = @transform_4, window_bounds = array<i64: 32, 32>}, {pipeline_mode = #tpu.pipeline_mode<synchronous>, transform_indices = @transform_5, window_bounds = array<i64: 1, 32>}, {transform_indices = @transform_6, window_bounds = array<i64: 1, 1, 128>}]} {
    %c0 = arith.constant 0 : index
    %c0_0 = arith.constant 0 : index
    %c0_1 = arith.constant 0 : index
    %0 = vector.load %arg2[%c0, %c0_0, %c0_1] : memref<1x8x32xbf16, #tpu.memory_space<vmem>>, vector<1x8x32xbf16>
    %1 = vector.shape_cast %0 : vector<1x8x32xbf16> to vector<8x32xbf16>
    %c0_2 = arith.constant 0 : index
    %c0_3 = arith.constant 0 : index
    %2 = vector.load %arg5[%c0_2, %c0_3] : memref<32x32xbf16, #tpu.memory_space<vmem>>, vector<32x32xbf16>
    %cst = arith.constant dense<0.000000e+00> : vector<8x32xf32>
    %3 = tpu.matmul %1, %2, %cst {dimension_numbers = #tpu.dot_dimension_numbers<[1], [0], [0], [1], [0, 0, 1, 1], [], []>} : vector<8x32xbf16>, vector<32x32xbf16>, vector<8x32xf32> -> vector<8x32xf32>
    %c0_4 = arith.constant 0 : index
    %c0_5 = arith.constant 0 : index
    %4 = vector.load %arg6[%c0_4, %c0_5] : memref<1x32xf32, #tpu.memory_space<vmem>>, vector<1x32xf32>
    %5 = vector.broadcast %4 : vector<1x32xf32> to vector<8x32xf32>
    %6 = arith.addf %3, %5 : vector<8x32xf32>
    %cst_6 = arith.constant 0.000000e+00 : f32
    %7 = vector.broadcast %cst_6 : f32 to vector<8x32xf32>
    %8 = arith.maximumf %6, %7 : vector<8x32xf32>
    %9 = vector.shape_cast %8 : vector<8x32xf32> to vector<1x8x32xf32>
    %10 = arith.truncf %9 : vector<1x8x32xf32> to vector<1x8x32xbf16>
    %c0_7 = arith.constant 0 : index
    %c0_8 = arith.constant 0 : index
    %11 = vector.load %arg3[%c0_7, %c0_8] : memref<32x4xbf16, #tpu.memory_space<vmem>>, vector<32x4xbf16>
    %12 = vector.shape_cast %11 : vector<32x4xbf16> to vector<1x32x4xbf16>
    %c0_9 = arith.constant 0 : index
    %c0_10 = arith.constant 0 : index
    %c0_11 = arith.constant 0 : index
    %13 = vector.load %arg1[%c0_9, %c0_10, %c0_11] : memref<1x4x256xbf16, #tpu.memory_space<vmem>>, vector<1x4x256xbf16>
    %cst_12 = arith.constant dense<0.000000e+00> : vector<1x32x256xf32>
    %14 = tpu.matmul %12, %13, %cst_12 {dimension_numbers = #tpu.dot_dimension_numbers<[2], [1], [1], [2], [0, 0, 0, 1, 1, 2], [0], [0]>} : vector<1x32x4xbf16>, vector<1x4x256xbf16>, vector<1x32x256xf32> -> vector<1x32x256xf32>
    %c0_13 = arith.constant 0 : index
    %c0_14 = arith.constant 0 : index
    %15 = vector.load %arg4[%c0_13, %c0_14] : memref<32x1xf32, #tpu.memory_space<vmem>>, vector<32x1xf32>
    %16 = vector.shape_cast %15 : vector<32x1xf32> to vector<1x32x1xf32>
    %17 = vector.broadcast %16 : vector<1x32x1xf32> to vector<1x32x256xf32>
    %18 = arith.addf %14, %17 : vector<1x32x256xf32>
    %cst_15 = arith.constant 0.000000e+00 : f32
    %19 = vector.broadcast %cst_15 : f32 to vector<1x32x256xf32>
    %20 = arith.maximumf %18, %19 : vector<1x32x256xf32>
    %21 = arith.truncf %20 : vector<1x32x256xf32> to vector<1x32x256xbf16>
    %cst_16 = arith.constant dense<0.000000e+00> : vector<1x8x256xf32>
    %22 = tpu.matmul %10, %21, %cst_16 {dimension_numbers = #tpu.dot_dimension_numbers<[2], [1], [1], [2], [0, 0, 0, 1, 1, 2], [0], [0]>} : vector<1x8x32xbf16>, vector<1x32x256xbf16>, vector<1x8x256xf32> -> vector<1x8x256xf32>
    %cst_17 = arith.constant dense<0xFF800000> : vector<1x8xf32>
    %23 = vector.multi_reduction <maximumf>, %22, %cst_17 [2] : vector<1x8x256xf32> to vector<1x8xf32>
    %24 = vector.shape_cast %23 : vector<1x8xf32> to vector<1x8x1xf32>
    %25 = vector.broadcast %24 : vector<1x8x1xf32> to vector<1x8x256xf32>
    %26 = arith.subf %22, %25 : vector<1x8x256xf32>
    %27 = math.exp %26 : vector<1x8x256xf32>
    %cst_18 = arith.constant dense<0.000000e+00> : vector<1x8xf32>
    %28 = vector.multi_reduction <add>, %27, %cst_18 [2] : vector<1x8x256xf32> to vector<1x8xf32>
    %29 = vector.shape_cast %28 : vector<1x8xf32> to vector<1x8x1xf32>
    %30 = tpu.reciprocal %29 {approx = true} : vector<1x8x1xf32> -> vector<1x8x1xf32>
    %31 = vector.broadcast %30 : vector<1x8x1xf32> to vector<1x8x256xf32>
    %32 = arith.mulf %27, %31 : vector<1x8x256xf32>
    %33 = arith.truncf %32 : vector<1x8x256xf32> to vector<1x8x256xbf16>
    %cst_19 = arith.constant dense<0.000000e+00> : vector<1x8x32xf32>
    %34 = tpu.matmul %33, %21, %cst_19 {dimension_numbers = #tpu.dot_dimension_numbers<[2], [2], [1], [1], [0, 0, 0, 1, 1, 1], [0], [0]>} : vector<1x8x256xbf16>, vector<1x32x256xbf16>, vector<1x8x32xf32> -> vector<1x8x32xf32>
    %35 = arith.mulf %9, %34 : vector<1x8x32xf32>
    %cst_20 = arith.constant dense<0.000000e+00> : vector<1x8xf32>
    %36 = vector.multi_reduction <add>, %35, %cst_20 [2] : vector<1x8x32xf32> to vector<1x8xf32>
    %37 = vector.shape_cast %36 : vector<1x8xf32> to vector<1x8x1xf32>
    %38 = arith.mulf %9, %9 : vector<1x8x32xf32>
    %cst_21 = arith.constant dense<0.000000e+00> : vector<1x8xf32>
    %39 = vector.multi_reduction <add>, %38, %cst_21 [2] : vector<1x8x32xf32> to vector<1x8xf32>
    %40 = vector.shape_cast %39 : vector<1x8xf32> to vector<1x8x1xf32>
    %41 = arith.mulf %34, %34 : vector<1x8x32xf32>
    %cst_22 = arith.constant dense<0.000000e+00> : vector<1x8xf32>
    %42 = vector.multi_reduction <add>, %41, %cst_22 [2] : vector<1x8x32xf32> to vector<1x8xf32>
    %43 = vector.shape_cast %42 : vector<1x8xf32> to vector<1x8x1xf32>
    %44 = arith.mulf %40, %43 : vector<1x8x1xf32>
    %cst_23 = arith.constant 9.99999993E-9 : f32
    %45 = vector.broadcast %cst_23 : f32 to vector<1x8x1xf32>
    %46 = arith.addf %44, %45 : vector<1x8x1xf32>
    %47 = math.rsqrt %46 : vector<1x8x1xf32>
    %48 = arith.mulf %37, %47 : vector<1x8x1xf32>
    %cst_24 = arith.constant dense<0.000000e+00> : vector<1x1xf32>
    %49 = vector.multi_reduction <add>, %48, %cst_24 [1] : vector<1x8x1xf32> to vector<1x1xf32>
    %50 = vector.shape_cast %49 : vector<1x1xf32> to vector<1x1x1xf32>
    %cst_25 = arith.constant 8.000000e+00 : f32
    %51 = vector.broadcast %cst_25 : f32 to vector<1x1x1xf32>
    %52 = arith.divf %50, %51 : vector<1x1x1xf32>
    %cst_26 = arith.constant dense<0.000000e+00> : vector<1x32x256xf32>
    %53 = tpu.matmul %10, %33, %cst_26 {dimension_numbers = #tpu.dot_dimension_numbers<[1], [1], [2], [2], [0, 0, 0, 2, 1, 2], [0], [0]>} : vector<1x8x32xbf16>, vector<1x8x256xbf16>, vector<1x32x256xf32> -> vector<1x32x256xf32>
    %54 = arith.mulf %53, %20 : vector<1x32x256xf32>
    %cst_27 = arith.constant dense<0.000000e+00> : vector<1x256xf32>
    %55 = vector.multi_reduction <add>, %54, %cst_27 [1] : vector<1x32x256xf32> to vector<1x256xf32>
    %56 = vector.shape_cast %55 : vector<1x256xf32> to vector<1x1x256xf32>
    %57 = arith.mulf %53, %53 : vector<1x32x256xf32>
    %cst_28 = arith.constant dense<0.000000e+00> : vector<1x256xf32>
    %58 = vector.multi_reduction <add>, %57, %cst_28 [1] : vector<1x32x256xf32> to vector<1x256xf32>
    %59 = vector.shape_cast %58 : vector<1x256xf32> to vector<1x1x256xf32>
    %60 = arith.mulf %20, %20 : vector<1x32x256xf32>
    %cst_29 = arith.constant dense<0.000000e+00> : vector<1x256xf32>
    %61 = vector.multi_reduction <add>, %60, %cst_29 [1] : vector<1x32x256xf32> to vector<1x256xf32>
    %62 = vector.shape_cast %61 : vector<1x256xf32> to vector<1x1x256xf32>
    %63 = arith.mulf %59, %62 : vector<1x1x256xf32>
    %cst_30 = arith.constant 9.99999993E-9 : f32
    %64 = vector.broadcast %cst_30 : f32 to vector<1x1x256xf32>
    %65 = arith.addf %63, %64 : vector<1x1x256xf32>
    %66 = math.rsqrt %65 : vector<1x1x256xf32>
    %67 = arith.mulf %56, %66 : vector<1x1x256xf32>
    %cst_31 = arith.constant dense<0.000000e+00> : vector<1x1xf32>
    %68 = vector.multi_reduction <add>, %67, %cst_31 [2] : vector<1x1x256xf32> to vector<1x1xf32>
    %69 = vector.shape_cast %68 : vector<1x1xf32> to vector<1x1x1xf32>
    %cst_32 = arith.constant 2.560000e+02 : f32
    %70 = vector.broadcast %cst_32 : f32 to vector<1x1x1xf32>
    %71 = arith.divf %69, %70 : vector<1x1x1xf32>
    %72 = arith.addf %52, %71 : vector<1x1x1xf32>
    %73 = tpu.iota {dimensions = array<i32: 1>} : vector<1x1x128xi32>
    %cst_33 = arith.constant 0.000000e+00 : f32
    %74 = vector.broadcast %cst_33 : f32 to vector<1x1x128xf32>
    %c0_i32 = arith.constant 0 : i32
    %75 = vector.broadcast %c0_i32 : i32 to vector<1x1x128xi32>
    %76 = arith.cmpi eq, %73, %75 : vector<1x1x128xi32>
    %77 = vector.shape_cast %72 : vector<1x1x1xf32> to vector<1x1xf32>
    %cst_34 = arith.constant 0.000000e+00 : f32
    %78 = vector.shape_cast %77 : vector<1x1xf32> to vector<1x1x1xf32>
    %79 = vector.broadcast %78 : vector<1x1x1xf32> to vector<1x1x128xf32>
    %80 = vector.broadcast %cst_34 : f32 to vector<1x1x128xf32>
    %81 = arith.select %76, %79, %80 : vector<1x1x128xi1>, vector<1x1x128xf32>
    %82 = arith.addf %74, %81 : vector<1x1x128xf32>
    %c0_35 = arith.constant 0 : index
    %c0_36 = arith.constant 0 : index
    %c0_37 = arith.constant 0 : index
    %83 = vector.load %arg7[%c0_35, %c0_36, %c0_37] : memref<1x1x128xf32, #tpu.memory_space<vmem>>, vector<1x1x128xf32>
    tpu.vector_store %arg7[%c0_35, %c0_36, %c0_37], %82 {strides = array<i32>} : memref<1x1x128xf32, #tpu.memory_space<vmem>>, vector<1x1x128xf32>,
    return
  }
  func.func @transform_0(%arg0: i32) -> (i32, i32, i32) {
    %c0_i32 = arith.constant 0 : i32
    %c0_i32_0 = arith.constant 0 : i32
    %c0_i32_1 = arith.constant 0 : i32
    return %arg0, %c0_i32, %c0_i32_0 : i32, i32, i32
  }
  func.func @transform_1(%arg0: i32) -> (i32, i32, i32) {
    %c0_i32 = arith.constant 0 : i32
    %c0_i32_0 = arith.constant 0 : i32
    %c0_i32_1 = arith.constant 0 : i32
    return %arg0, %c0_i32, %c0_i32_0 : i32, i32, i32
  }
  func.func @transform_2(%arg0: i32) -> (i32, i32) {
    %c0_i32 = arith.constant 0 : i32
    %c0_i32_0 = arith.constant 0 : i32
    %c0_i32_1 = arith.constant 0 : i32
    return %c0_i32, %c0_i32_0 : i32, i32
  }
  func.func @transform_3(%arg0: i32) -> (i32, i32) {
    %c0_i32 = arith.constant 0 : i32
    %c0_i32_0 = arith.constant 0 : i32
    %c0_i32_1 = arith.constant 0 : i32
    return %c0_i32, %c0_i32_0 : i32, i32
  }
  func.func @transform_4(%arg0: i32) -> (i32, i32) {
    %c0_i32 = arith.constant 0 : i32
    %c0_i32_0 = arith.constant 0 : i32
    %c0_i32_1 = arith.constant 0 : i32
    return %c0_i32, %c0_i32_0 : i32, i32
  }
  func.func @transform_5(%arg0: i32) -> (i32, i32) {
    %c0_i32 = arith.constant 0 : i32
    %c0_i32_0 = arith.constant 0 : i32
    %c0_i32_1 = arith.constant 0 : i32
    return %c0_i32, %c0_i32_0 : i32, i32
  }
  func.func @transform_6(%arg0: i32) -> (i32, i32, i32) {
    %c0_i32 = arith.constant 0 : i32
    %c0_i32_0 = arith.constant 0 : i32
    %c0_i32_1 = arith.constant 0 : i32
    return %arg0, %c0_i32, %c0_i32_0 : i32, i32, i32
  }
}

</mosaic_0001>

<bundles_post_ra>
// kernel: image_text_cross_attention.1
= control target key start
LH: loop header
LB: loop body
LE: loop exit
PB: predicated region body
PF: predicated region fallthrough
CT: control target
= control target key end

     0   :  { %s941_s21 = smov 0   ;;  %s1061_s0 = inlined_call_operand.vmem [shape: bf16[2,4,256], index: 0, kind: input, shape index: {}]   ;;  %s1062_s1 = inlined_call_operand.vmem [shape: bf16[2,8,32], index: 1, kind: input, shape index: {}]   ;;  %s1063_s2 = inlined_call_operand.vmem [shape: bf16[32,4], index: 2, kind: input, shape index: {}]   ;;  %s1064_s3 = inlined_call_operand.vmem [shape: f32[32,1], index: 3, kind: input, shape index: {}]   ;;  %s1065_s4 = inlined_call_operand.vmem [shape: bf16[32,32], index: 4, kind: input, shape index: {}]   ;;  %s1066_s5 = inlined_call_operand.vmem [shape: f32[1,32], index: 5, kind: input, shape index: {}]   ;;  %s1067_s6 = inlined_call_operand.vmem [shape: f32[2,1,128], index: 6, kind: output, shape index: {}]  }
   0x1 LB: > { %s828_s22 = sadd.s32 4294967295, %s901_s21   ;;  %p832_p0 = scmp.ge.s32.totalorder %s901_s21, 1  ;;  %s901_s21 = sphi %s941_s21, %s16_s21  }
   0x2   : > { %p221_p1 = scmp.lt.s32.totalorder %s901_s21, 3 }
   0x4   : > { %p222_p2 = pnand %p832_p0, %p221_p1 }
   0x5   : > { %p253_p3 = scmp.lt.s32.totalorder (!%p222_p2), %s828_s22, 1  ;;  %v903_v0 = vmov (!%p222_p2), 0   ;;  %v904_v1 = vmov (!%p222_p2), 0.0   ;;  %v880_v2 = vld [vmem:[%s1065_s4] sm:$0xff] (!%p222_p2)   ;;  %vm391_vm0 = vcmask (!%p222_p2), 1041408   ;;  %v882_v3 = vld [vmem:[%s1065_s4 + $0x8] sm:$0xff] (!%p222_p2)  }
   0x6   : > { %225 = sbr.rel (%p222_p2) target bundleno = 1195 (0x4ab), region = 44  ;;  %430 = vmatprep.mubr.bf16.mxu1 (!%p222_p2), %v903_v0  ;;  %877 = vset.pattern.permute.xlu0 (!%p222_p2), %v903_v0  ;;  %vm905_vm1 = vmmov (!%p222_p2), 0   ;;  %v341_v4 = vld [vmem:[%s1064_s3] sm:$0xff] (!%p222_p2)  ;;  %v343_v5 = vld [vmem:[%s1064_s3 + $0x10] sm:$0xff] (!%p222_p2)  ;;  %v342_v7 = vld [vmem:[%s1064_s3 + $0x8] sm:$0xff] (!%p222_p2)  ;;  %vm290_vm2 = vcmask (!%p222_p2), 261120  }
   0x7   : > { %856 = vmatprep.subr.bf16.mxu0 (!%p222_p2), %v904_v1  ;;  %878 = vset.pattern.permute.xlu1 (!%p222_p2), %v903_v0  ;;  %v344_v10 = vld [vmem:[%s1064_s3 + $0x18] sm:$0xff] (!%p222_p2)  ;;  %v879_v12 = vld [vmem:[%s1063_s2] sm:$0xff] (!%p222_p2)   ;;  %vm384_vm3 = vcmask (!%p222_p2), 31744   ;;  %v881_v13 = vld [vmem:[%s1063_s2 + $0x8] sm:$0xff] (!%p222_p2)   ;;  %vm611_vm4 = vcmask (!%p222_p2), 1043456   ;;  %vm604_vm5 = vcmask (!%p222_p2), 64512  }
   0x8   : > { %857 = vmatpush3.bf16.msra.mxu0 (!%p222_p2), %v880_v2  ;;  %860 = vmatprep.mubr.msk.bf16.mxu0 (!%p222_p2), %vm905_vm1, %v904_v1  ;;  %v836_v33 = vld [vmem:[%s1066_s5] ss:$0 sm:$0xff] (!%p222_p2) }
   0x9   : > { %858 = vmatprep.subr.bf16.mxu0 (!%p222_p2), %v904_v1  ;;  %347 = vperm.xlu0 (!%p222_p2), %877, %v341_v4  }
   0xa   : > { %357 = vperm.xlu1 (!%p222_p2), %878, %v343_v5  }
   0xc   : > { %859 = vmatpush3.bf16.msra.mxu0 (!%p222_p2), %v882_v3 }
   0xd   : > { %s1069_s22 = smov (!%p253_p3, %s828_s22), 1  ;;  %352 = vperm.xlu0 %877, %v342_v7  }
   0xe   : > { %s852_s25 = sshll.u32 %s1069_s22, 2  ;;  %362 = vperm.xlu1 %878, %v344_v10   ;;  %s264_s28 = scalar_lea.vmem %s1067_s6, %s1069_s22 }
   0xf   : > { %s257_s8 = scalar_lea.vmem %s1061_s0, %s852_s25  ;;  %s261_s11 = scalar_lea.vmem %s1062_s1, %s852_s25 }
  0x10   : > { %v842_v6 = vld.sshfl [vmem:[%s257_s8] sm:$0x33 pattern:$0x76325410] }
  0x11   : > { %v383_v8 = vcombine.high %v842_v6, %v842_v6  ;;  %v393_v9 = vsel %vm391_vm0, %v842_v6, 0  ;;  %v266_v11 = vld [vmem:[%s261_s11] sm:$0xf] }
  0x12   : > { %861 = vmatmul.mubr.msk.bf16.vlgmr.msra.gmra.mrb[0].mxu0 %vm290_vm2, %v266_v11 }
  0x13   : > { %843 = vmatprep.subr.msk.bf16.mxu1 %vm391_vm0, %v383_v8  ;;  %498 = vmatprep.mubr.bf16.mxu0 %v903_v0 }
  0x14   : > { %399 = vmatpush1.bf16.msra.mxu1 %v393_v9 }
  0x17   : > { %844 = vmatmul.mubr.msk.bf16.vlgmr.msra.gmra.mrb[0].mxu1 %vm384_vm3, %v879_v12 }
  0x18   : > { %440 = vmatprep.mubr.bf16.mxu1 %v903_v0 }
  0x1f   : > { %845 = vmatmul.mubr.msk.bf16.gmra.mrb[4].mxu1 %vm384_vm3, %v881_v13 }
  0x88   : > { %v348_v14 = vpop.permute.xlu0 %347 }
  0x89   : > { %v358_v27 = vpop.permute.xlu1 %357 }
  0x8c   : > { %v353_v16 = vpop.permute.xlu0 %352 }
  0x8d   : > { %v363_v38 = vpop.permute.xlu1 %362 }
  0xe5   : > { %v328_v15 = vpop.f32.mrb[0].mxu0 }
  0xe6   : > { %v862_v17 = vpop.f32.mrb[1].mxu0  ;;  %v329_v41 = vadd.f32 %v836_v33, %v328_v15 }
  0xe7   : > { %v331_v19 = vpop.f32.mrb[2].mxu0 }
  0xe8   : > { %v863_v21 = vpop.f32.mrb[3].mxu0  ;;  %v1011_v49 = vmax.f32 %v329_v41, 0.0 }
  0xea   : > { %v432_v18 = vpop.f32.mrb[0].mxu1  ;;  %v335_v53 = vpack.c.bf16 %v1011_v49, %v1011_v49  ;;  %v568_v4 = vmul.f32 %v1011_v49, %v1011_v49 }
  0xeb   : > { %v434_v20 = vpop.f32.mrb[1].mxu1  ;;  %v433_v24 = vadd.f32 %v432_v18, %v348_v14 }
  0xec   : > { %v435_v22 = vadd.f32 %v434_v20, %v348_v14  ;;  %v436_v23 = vpop.f32.mrb[2].mxu1  ;;  %v569_v5 = vsel %vm290_vm2, %v568_v4, 0.0 }
  0xed   : > { %v437_v25 = vadd.f32 %v436_v23, %v353_v16  ;;  %v438_v26 = vpop.f32.mrb[3].mxu1  ;;  %v996_v32 = vmax.f32 %v433_v24, 0.0 }
  0xee   : > { %v439_v28 = vadd.f32 %v438_v26, %v353_v16  ;;  %v992_v30 = vmax.f32 %v435_v22, 0.0 }
  0xef   : > { %v990_v29 = vmax.f32 %v437_v25, 0.0  ;;  %v723_v17 = vmul.f32 %v996_v32, %v996_v32 }
  0xf0   : > { %v994_v31 = vmax.f32 %v439_v28, 0.0  ;;  %v724_v18 = vmul.f32 %v992_v30, %v992_v30 }
  0xf1   : > { %v459_v36 = vpack.c.bf16 %v990_v29, %v996_v32  ;;  %v725_v15 = vmul.f32 %v990_v29, %v990_v29 }
  0xf2   : > { %v442_v34 = vpop.f32.mrb[4].mxu1  ;;  %v460_v35 = vpack.c.bf16 %v994_v31, %v992_v30  ;;  %v726_v16 = vmul.f32 %v994_v31, %v994_v31 }
  0xf3   : > { %v444_v37 = vpop.f32.mrb[5].mxu1  ;;  %v443_v42 = vadd.f32 %v442_v34, %v358_v27  ;;  %v731_v20 = vadd.f32 %v725_v15, %v723_v17 }
  0xf4   : > { %v445_v39 = vadd.f32 %v444_v37, %v358_v27  ;;  %v446_v40 = vpop.f32.mrb[6].mxu1  ;;  %466 = vmatprep.subr.bf16.mxu0 %v460_v35  ;;  %524 = vmatprep.subr.bf16.mxu1 %v460_v35  ;;  %v740_v21 = vadd.f32 %v726_v16, %v724_v18 }
  0xf5   : > { %v447_v43 = vadd.f32 %v446_v40, %v363_v38  ;;  %v448_v44 = vpop.f32.mrb[7].mxu1  ;;  %467 = vmatpush1.bf16.msra.mxu0 %v459_v36  ;;  %525 = vmatpush1.bf16.xpose.msra.mxu1 %v459_v36  ;;  %v1013_v50 = vmax.f32 %v443_v42, 0.0 }
  0xf6   : > { %v449_v45 = vadd.f32 %v448_v44, %v363_v38  ;;  %v1007_v47 = vmax.f32 %v445_v39, 0.0 }
  0xf7   : > { %v1005_v46 = vmax.f32 %v447_v43, 0.0  ;;  %v727_v19 = vmul.f32 %v1013_v50, %v1013_v50 }
  0xf8   : > { %v1009_v48 = vmax.f32 %v449_v45, 0.0 }
  0xf9   : > { %v461_v52 = vpack.c.bf16 %v1005_v46, %v1013_v50  ;;  %v732_v22 = vadd.f32 %v731_v20, %v727_v19  ;;  %v729_v24 = vmul.f32 %v1005_v46, %v1005_v46 }
  0xfa   : > { %v462_v51 = vpack.c.bf16 %v1009_v48, %v1007_v47  ;;  %v730_v25 = vmul.f32 %v1009_v48, %v1009_v48 }
  0xfb   : > { %v733_v26 = vadd.f32 %v732_v22, %v729_v24 }
  0xfc   : > { %468 = vmatprep.subr.bf16.mxu0 %v462_v51  ;;  %526 = vmatprep.subr.bf16.mxu1 %v462_v51 }
  0xfd   : > { %469 = vmatpush1.bf16.msra.mxu0 %v461_v52  ;;  %527 = vmatpush1.bf16.xpose.msra.mxu1 %v461_v52  ;;  %v734_v35 = vrot.slane %v733_v26, 4 }
  0xff   : > { %v735_v44 = vadd.f32 %v734_v35, %v733_v26 }
 0x100   : > { %846 = vmatmul.mubr.msk.bf16.vlgmr.msra.gmra.mrb[4].mxu0 %vm290_vm2, %v335_v53 }
 0x101   : > { %650 = vmatprep.mubr.bf16.mxu0 %v903_v0 }
 0x1d3   : > { %v500_v54 = vpop.f32.mrb[4].mxu0 }
 0x1d4   : > { %v502_v55 = vpop.f32.mrb[5].mxu0 }
 0x1d5   : > { %v504_v56 = vpop.f32.mrb[6].mxu0  ;;  %v507_v57 = vmax.f32 %v500_v54, %v502_v55 }
 0x1d6   : > { %v505_v58 = vpop.f32.mrb[7].mxu0 }
 0x1d7   : > { %508 = vmax.xlane.f32.xlu0 %v507_v57 }
 0x204   : > { %588 = vxpose.xlu0.c.b16.start.end [1/1] (short) (narrow) %v335_v53, 32 }
 0x264   : > { %v509_v59 = vpop.xlane.xlu0 %508 }
 0x265   : > { %v510_v60 = vsub.f32 %v500_v54, %v509_v59  ;;  %v511_v61 = vsub.f32 %v502_v55, %v509_v59 }
 0x267   : > { %v512_v62 = vmul.f32 1.442695, %v510_v60  ;;  %v514_v63 = vmul.f32 1.442695, %v511_v61 }
 0x269   : > { %883 = vpow2.f32 %v512_v62 }
 0x26a   : > { %885 = vpow2.f32 %v514_v63  ;;  %v596_v13 = vpop.trf.xlu0 }
 0x26e   : > { %v597_v14 = vpop.trf.xlu0 }
 0x273   : > { %v884_v1 = vpop.eup %883 }
 0x274   : > { %v886_v2 = vpop.eup %885 }
 0x275   : > { %v516_v3 = vadd.f32 %v886_v2, %v884_v1 }
 0x277   : > { %517 = vadd.xlane.f32.xlu1 %v516_v3 }
 0x27b   : > { %570 = vadd.xlane.f32.xlu1 %v569_v5 }
 0x304   : > { %v518_v6 = vpop.xlane.xlu1 %517 }
 0x305   : > { %887 = vrcp.f32 %v518_v6 }
 0x30f   : > { %v888_v7 = vpop.eup %887 }
 0x310   : > { %v520_v8 = vmul.f32 %v888_v7, %v884_v1  ;;  %v521_v9 = vmul.f32 %v888_v7, %v886_v2 }
 0x312   : > { %v523_v10 = vpack.c.bf16 %v521_v9, %v521_v9  ;;  %v522_v11 = vpack.c.bf16 %v520_v8, %v520_v8 }
 0x314   : > { %556 = vmatprep.mubr.bf16.mxu1 %v523_v10  ;;  %847 = vmatprep.subr.msk.bf16.mxu0 %vm611_vm4, %v523_v10  ;;  %v613_v12 = vsel %vm611_vm4, %v522_v11, 0 }
 0x315   : > { %864 = vmatprep.subr.msk.bf16.mxu1 %vm611_vm4, %v523_v10  ;;  %557 = vmatmul.mubr.bf16.vlgmr.msra.gmra.mrb[8].mxu1 %v522_v11 }
 0x316   : > { %619 = vmatpush1.bf16.msra.mxu0 %v613_v12  ;;  %865 = vmatpush1.bf16.msra.mxu1 %v613_v12 }
 0x317   : > { %660 = vmatprep.mubr.bf16.mxu1 %v903_v0  ;;  %v728_v0 = vmul.f32 %v1007_v47, %v1007_v47 }
 0x319   : > { %848 = vmatmul.mubr.msk.bf16.vlgmr.msra.gmra.mrb[8].mxu0 %vm604_vm5, %v596_v13  ;;  %v741_v23 = vadd.f32 %v740_v21, %v728_v0 }
 0x31b   : > { %v742_v27 = vadd.f32 %v741_v23, %v730_v25 }
 0x31d   : > { %849 = vmatmul.mubr.msk.bf16.vlgmr.msra.gmra.mrb[12].mxu1 %vm604_vm5, %v597_v14  ;;  %v743_v36 = vrot.slane %v742_v27, 4 }
 0x31f   : > { %v744_v45 = vadd.f32 %v743_v36, %v742_v27 }
 0x321   : > { %v745_v15 = vrot.slane %v744_v45, 2 }
 0x323   : > { %v746_v20 = vadd.f32 %v745_v15, %v744_v45 }
 0x3e8   : > { %v558_v28 = vpop.f32.mrb[8].mxu1 }
 0x3e9   : > { %v572_v33 = vmul.f32 %v558_v28, %v558_v28  ;;  %v560_v34 = vpop.f32.mrb[9].mxu1  ;;  %v564_v38 = vmul.f32 %v558_v28, %v1011_v49 }
 0x3ea   : > { %v561_v37 = vpop.f32.mrb[10].mxu1 }
 0x3eb   : > { %v562_v39 = vpop.f32.mrb[11].mxu1  ;;  %v573_v40 = vsel %vm290_vm2, %v572_v33, 0.0  ;;  %v565_v56 = vsel %vm290_vm2, %v564_v38, 0.0 }
 0x3ec   : > { %v652_v41 = vpop.f32.mrb[8].mxu0  ;;  %574 = vadd.xlane.f32.xlu1 %v573_v40 }
 0x3ed   : > { %v697_v42 = vmul.f32 %v652_v41, %v652_v41  ;;  %v654_v43 = vpop.f32.mrb[9].mxu0  ;;  %v671_v52 = vmul.f32 %v652_v41, %v996_v32 }
 0x3ee   : > { %v656_v51 = vpop.f32.mrb[10].mxu0  ;;  %v672_v49 = vmul.f32 %v654_v43, %v992_v30  ;;  %v698_v57 = vmul.f32 %v654_v43, %v654_v43 }
 0x3ef   : > { %v673_v53 = vmul.f32 %v656_v51, %v990_v29  ;;  %v699_v54 = vmul.f32 %v656_v51, %v656_v51  ;;  %v658_v55 = vpop.f32.mrb[11].mxu0 }
 0x3f0   : > { %v674_v58 = vmul.f32 %v658_v55, %v994_v31  ;;  %v700_v59 = vmul.f32 %v658_v55, %v658_v55  ;;  %566 = vadd.xlane.f32.xlu1 %v565_v56  ;;  %v662_v60 = vpop.f32.mrb[12].mxu1 }
 0x3f1   : > { %v679_v61 = vadd.f32 %v673_v53, %v671_v52  ;;  %v705_v62 = vadd.f32 %v699_v54, %v697_v42  ;;  %v675_v63 = vmul.f32 %v662_v60, %v1013_v50  ;;  %v701_v1 = vmul.f32 %v662_v60, %v662_v60  ;;  %v664_v32 = vpop.f32.mrb[13].mxu1 }
 0x3f2   : > { %v688_v2 = vadd.f32 %v674_v58, %v672_v49  ;;  %v714_v29 = vadd.f32 %v700_v59, %v698_v57  ;;  %v676_v3 = vmul.f32 %v664_v32, %v1007_v47  ;;  %v702_v4 = vmul.f32 %v664_v32, %v664_v32  ;;  %v666_v5 = vpop.f32.mrb[14].mxu1 }
 0x3f3   : > { %v680_v6 = vadd.f32 %v679_v61, %v675_v63  ;;  %v706_v30 = vadd.f32 %v705_v62, %v701_v1  ;;  %v677_v7 = vmul.f32 %v666_v5, %v1005_v46  ;;  %v703_v31 = vmul.f32 %v666_v5, %v666_v5  ;;  %v668_v8 = vpop.f32.mrb[15].mxu1  ;;  %v571_v61 = vpop.xlane.xlu1 %570 }
 0x3f4   : > { %v689_v9 = vadd.f32 %v688_v2, %v676_v3  ;;  %v715_v10 = vadd.f32 %v714_v29, %v702_v4  ;;  %v678_v11 = vmul.f32 %v668_v8, %v1009_v48  ;;  %v704_v12 = vmul.f32 %v668_v8, %v668_v8 }
 0x3f5   : > { %v736_v50 = vrot.slane %v735_v44, 2  ;;  %v681_v13 = vadd.f32 %v680_v6, %v677_v7  ;;  %v707_v14 = vadd.f32 %v706_v30, %v703_v31  ;;  %v747_v48 = vrot.slane %v746_v20, 1 }
 0x3f6   : > { %v690_v16 = vadd.f32 %v689_v9, %v678_v11  ;;  %v716_v17 = vadd.f32 %v715_v10, %v704_v12  ;;  %v763_v7 = vlaneseq }
 0x3f7   : > { %v708_v47 = vrot.slane %v707_v14, 4  ;;  %v737_v19 = vadd.f32 %v736_v50, %v735_v44  ;;  %v682_v22 = vrot.slane %v681_v13, 4  ;;  %v748_v39 = vadd.f32 %v747_v48, %v746_v20 }
 0x3f8   : > { %v717_v18 = vrot.slane %v716_v17, 4  ;;  %v691_v26 = vrot.slane %v690_v16, 4  ;;  %v764_v8 = vshrl.u32 %v763_v7, 7 }
 0x3f9   : > { %v709_v0 = vadd.f32 %v708_v47, %v707_v14  ;;  %v738_v24 = vrot.slane %v737_v19, 1  ;;  %v683_v33 = vadd.f32 %v682_v22, %v681_v13 }
 0x3fa   : > { %v718_v21 = vadd.f32 %v717_v18, %v716_v17  ;;  %v692_v37 = vadd.f32 %v691_v26, %v690_v16  ;;  %vm765_vm6 = vcmp.eq.s32.totalorder %v764_v8, 0 }
 0x3fb   : > { %v710_v46 = vrot.slane %v709_v0, 2  ;;  %v739_v35 = vadd.f32 %v738_v24, %v737_v19  ;;  %v684_v41 = vrot.slane %v683_v33, 2 }
 0x3fc   : > { %v719_v23 = vrot.slane %v718_v21, 2  ;;  %v693_v44 = vrot.slane %v692_v37, 2 }
 0x3fd   : > { %v711_v25 = vadd.f32 %v710_v46, %v709_v0  ;;  %v685_v51 = vadd.f32 %v684_v41, %v683_v33 }
 0x3fe   : > { %v720_v27 = vadd.f32 %v719_v23, %v718_v21  ;;  %v694_v52 = vadd.f32 %v693_v44, %v692_v37 }
 0x3ff   : > { %v712_v28 = vrot.slane %v711_v25, 1  ;;  %v686_v53 = vrot.slane %v685_v51, 1 }
 0x400   : > { %v721_v34 = vrot.slane %v720_v27, 1  ;;  %v695_v54 = vrot.slane %v694_v52, 1 }
 0x401   : > { %v713_v36 = vadd.f32 %v712_v28, %v711_v25  ;;  %v687_v55 = vadd.f32 %v686_v53, %v685_v51 }
 0x402   : > { %v722_v38 = vadd.f32 %v721_v34, %v720_v27  ;;  %v696_v49 = vadd.f32 %v695_v54, %v694_v52 }
 0x403   : > { %v749_v40 = vmul.f32 %v739_v35, %v713_v36 }
 0x404   : > { %v750_v42 = vmul.f32 %v748_v39, %v722_v38 }
 0x405   : > { %v751_v43 = vadd.f32 1e-08, %v749_v40 }
 0x406   : > { %v752_v45 = vadd.f32 1e-08, %v750_v42 }
 0x407   : > { %889 = vrsqrt.f32 %v751_v43 }
 0x408   : > { %891 = vrsqrt.f32 %v752_v45 }
 0x411   : > { %v890_v56 = vpop.eup %889 }
 0x412   : > { %v892_v57 = vpop.eup %891  ;;  %v755_v58 = vmul.f32 %v890_v56, %v687_v55 }
 0x413   : > { %v756_v59 = vmul.f32 %v892_v57, %v696_v49 }
 0x415   : > { %v757_v60 = vadd.f32 %v756_v59, %v755_v58 }
 0x417   : > { %758 = vadd.xlane.f32.xlu1 %v757_v60 }
 0x479   : > { %v575_v62 = vpop.xlane.xlu1 %574 }
 0x47a   : > { %v576_v63 = vmul.f32 %v575_v62, %v571_v61 }
 0x47c   : > { %v577_v1 = vadd.f32 1e-08, %v576_v63 }
 0x47d   : > { %v567_v2 = vpop.xlane.xlu1 %566 }
 0x47e   : > { %893 = vrsqrt.f32 %v577_v1 }
 0x488   : > { %v894_v32 = vpop.eup %893 }
 0x489   : > { %v579_v29 = vmul.f32 %v894_v32, %v567_v2 }
 0x48b   : > { %v580_v3 = vrot.slane %v579_v29, 4 }
 0x48d   : > { %v581_v4 = vadd.f32 %v580_v3, %v579_v29 }
 0x48f   : > { %v582_v5 = vrot.slane %v581_v4, 2 }
 0x491   : > { %v583_v6 = vadd.f32 %v582_v5, %v581_v4 }
 0x493   : > { %v584_v30 = vrot.slane %v583_v6, 1 }
 0x495   : > { %v585_v31 = vadd.f32 %v584_v30, %v583_v6 }
 0x497   : > { %v587_v10 = vmul.f32 0.125, %v585_v31 }
 0x4a4   : > { %v759_v9 = vpop.xlane.xlu1 %758 }
 0x4a5   : > { %v761_v11 = vmul.f32 0.00390625, %v759_v9 }
 0x4a7   : > { %v762_v12 = vadd.f32 %v761_v11, %v587_v10 }
 0x4a9   : > { %v766_v50 = vsel %vm765_vm6, %v762_v12, 0.0 }
 0x4aa   : > { %768 = vst [vmem:[%s264_s28] sm:$0x1] %v766_v50 }
 0x4ab PF: > { %s16_s21 = sadd.s32 1, %s901_s21  }
 0x4ac   : > { %p13_p4 = scmp.ge.s32.totalorder %s16_s21, 4  }
 0x4ae   :  { %15 = sbr.rel (!%p13_p4) target bundleno = 1 (0x1), region = 77 }

</bundles_post_ra>
